<compile_context>
chip_gen: v7x
topology: tpu7x:2x2x1
jax: 0.10.0
libtpu: 0.0.40
codegen_flags: <defaults>
</compile_context>

<pallas_src>
import functools
import math

import jax
import jax.numpy as jnp
from jax.experimental import pallas as pl
from jax.experimental.pallas import tpu as pltpu


def _round_up(x: int, m: int) -> int:
    return ((x + m - 1) // m) * m


def _fused_mlp_kernel(*refs, num_layers: int, relu_flags, compute_dtype):
    """refs = (x_ref, w0, b0, w1, b1, ..., w_{L-1}, b_{L-1}, o_ref).

    Chains every Linear(+ReLU) inside one kernel; intermediate activations live
    in VMEM/vregs only. Matmuls run on the MXU with f32 accumulation; bias add
    and ReLU stay f32 on the VPU.
    """
    x_ref = refs[0]
    o_ref = refs[-1]
    h = x_ref[...]
    for l in range(num_layers):            # static unroll (few, tiny layers)
        w = refs[1 + 2 * l][...]            # (K_l, N_l) bf16 (zero padded)
        b = refs[2 + 2 * l][...]            # (1, N_l)   f32  (zero padded)
        y = jnp.dot(h.astype(compute_dtype), w,
                    preferred_element_type=jnp.float32)
        y = y + b
        if relu_flags[l]:
            y = jnp.maximum(y, 0.0)
        h = y
    o_ref[...] = h.astype(o_ref.dtype)


def fused_mlp(x, weights, biases, relu_flags, *,
              compute_dtype=jnp.bfloat16, out_dtype=jnp.float32,
              max_batch_tile=1024):
    """x: (B, Din) f32 or bf16 (Din = REAL emb_dim, no padding required).
    weights[l]: (K_l, N_l) bf16, zero padded; K_0 == Din, K_{l+1} == N_l.
    biases[l]:  (1, N_l) f32, zero padded.
    Returns (B_pad, N_last) out_dtype; caller slices the valid window."""
    B, Din = x.shape
    assert weights[0].shape[0] == Din
    num_layers = len(weights)
    Dout_last = weights[-1].shape[1]

    # --- batch tiling -------------------------------------------------------
    # >= 2 tiles when B > 8 so the "parallel" grid axis can shard across v7x's
    # two TensorCores; tile size from cdiv so batch overpad is < one tile.
    if B > 8:
        num_tiles = max(pl.cdiv(B, max_batch_tile), 2)
    else:
        num_tiles = 1
    BM = _round_up(pl.cdiv(B, num_tiles), 8)
    grid_b = pl.cdiv(B, BM)
    B_pad = grid_b * BM
    if B_pad != B:
        x = jnp.pad(x, ((0, B_pad - B), (0, 0)))

    # x tile: (BM, Din) -- last dim equals the full array dim, so it is exempt
    # from the 128-lane divisibility rule; BM is a multiple of 8 sublanes.
    in_specs = [pl.BlockSpec((BM, Din), lambda i: (i, 0))]
    operands = [x]
    for w, b in zip(weights, biases):
        # Constant index_map -> each weight/bias DMA'd once, resident in VMEM
        # across all batch tiles.
        in_specs.append(pl.BlockSpec(w.shape, lambda i: (0, 0)))
        in_specs.append(pl.BlockSpec(b.shape, lambda i: (0, 0)))
        operands.append(w)
        operands.append(b)

    kernel = functools.partial(
        _fused_mlp_kernel,
        num_layers=num_layers,
        relu_flags=tuple(relu_flags),
        compute_dtype=compute_dtype,
    )

    # --- explicit VMEM budget (double-buffered x/out tiles + resident params)
    x_bytes_elem = jnp.dtype(x.dtype).itemsize
    out_bytes_elem = jnp.dtype(out_dtype).itemsize
    param_bytes = sum(int(w.size) * jnp.dtype(w.dtype).itemsize for w in weights)
    param_bytes += sum(int(b.size) * jnp.dtype(b.dtype).itemsize for b in biases)
    x_tile_bytes = BM * Din * x_bytes_elem
    out_tile_bytes = BM * Dout_last * out_bytes_elem
    vmem_need = 2 * (x_tile_bytes + out_tile_bytes) + 2 * param_bytes + (8 << 20)
    # Clamp to 64 MiB so the request is valid on v7x (64 MiB VMEM / TC).
    vmem_limit = int(min(64 << 20, max(vmem_need, 32 << 20)))

    # --- cost hint so XLA overlaps this cheap, DMA-latency-bound kernel ------
    flops = 2 * B_pad * sum(int(w.shape[0]) * int(w.shape[1]) for w in weights)
    bytes_accessed = (B_pad * Din * x_bytes_elem
                      + param_bytes
                      + B_pad * Dout_last * out_bytes_elem)
    cost = pl.CostEstimate(flops=flops, transcendentals=0,
                           bytes_accessed=bytes_accessed)

    return pl.pallas_call(
        kernel,
        out_shape=jax.ShapeDtypeStruct((B_pad, Dout_last), out_dtype),
        grid=(grid_b,),
        in_specs=in_specs,
        out_specs=pl.BlockSpec((BM, Dout_last), lambda i: (i, 0)),
        compiler_params=pltpu.CompilerParams(
            dimension_semantics=("parallel",),
            vmem_limit_bytes=vmem_limit,
        ),
        cost_estimate=cost,
    )(*operands)


class DecoderPallas:
    """Mirrors syntabtf.nn.vae.Decoder: Linear+ReLU stack, final Linear, plus sigmas."""

    def __init__(self, emb_dim, hidden_dim, data_dim, key, *,
                 param_dtype=jnp.bfloat16):
        dims = [emb_dim] + list(hidden_dim) + [data_dim]
        self.dims = dims
        self.data_dim = data_dim
        self.param_dtype = param_dtype
        # ReLU after every layer except the last (matches nn.Sequential build).
        self.relu_flags = tuple(li < len(dims) - 2 for li in range(len(dims) - 1))

        # Padding policy (per perf review):
        #   * first K dim = REAL emb_dim (no x padding, full-array block exempt)
        #   * hidden dims -> multiple of 16 (bf16 sublane packing of next K)
        #   * final output dim -> multiple of 128 (lane-dense unmasked stores)
        pad_out = [_round_up(d, 16) for d in dims[1:-1]] + [_round_up(data_dim, 128)]
        pad_in = [emb_dim] + pad_out[:-1]
        self.pad_in = pad_in
        self.pad_out = pad_out

        self.weights = []     # zero-padded bf16 (K_l, N_l)
        self.biases = []      # zero-padded f32  (1, N_l)
        self.ref_params = []  # unpadded f32 (W, b) for the reference check
        for li in range(len(dims) - 1):
            din, dout = dims[li], dims[li + 1]
            dinp, doutp = pad_in[li], pad_out[li]
            key, kw, kb = jax.random.split(key, 3)
            bound = 1.0 / math.sqrt(din)   # PyTorch-like uniform fan-in init
            W = jax.random.uniform(kw, (din, dout), jnp.float32, -bound, bound)
            b = jax.random.uniform(kb, (dout,), jnp.float32, -bound, bound)
            Wp = jnp.zeros((dinp, doutp), param_dtype).at[:din, :dout].set(
                W.astype(param_dtype))
            bp = jnp.zeros((1, doutp), jnp.float32).at[0, :dout].set(b)
            self.weights.append(Wp)
            self.biases.append(bp)
            self.ref_params.append((W, b))
        self.sigmas = jnp.ones((data_dim,), jnp.float32) * 0.1

    def __call__(self, x, *, trim=True):
        """x: (B, emb_dim) f32 or bf16 (no wrapper-side pad/cast is performed).
        trim=False returns the lane-padded slab so a downstream consumer can
        fuse the valid-window slice into its first op."""
        B = x.shape[0]
        out_pad = fused_mlp(x, self.weights, self.biases, self.relu_flags,
                            compute_dtype=self.param_dtype)
        if trim:
            out = out_pad[:B, :self.data_dim]
        else:
            out = out_pad
        return out, self.sigmas


if __name__ == "__main__":
    key = jax.random.PRNGKey(0)
    key, kx, kp = jax.random.split(key, 3)

    batch = 8
    emb_dim = 32
    hidden_dim = (64, 32)
    data_dim = 16

    x = jax.random.normal(kx, (batch, emb_dim), jnp.float32)

    dec = DecoderPallas(emb_dim, hidden_dim, data_dim, kp)
    fwd = jax.jit(dec.__call__)       # single fused pallas_call + sigmas const
    out, sigmas = fwd(x)
    jax.block_until_ready(out)
    jax.block_until_ready(sigmas)

    # Pure-JAX reference using the identical bf16 weights / f32 accumulation.
    h_ref = x
    for (W, b), relu in zip(dec.ref_params, dec.relu_flags):
        y = jnp.dot(h_ref.astype(jnp.bfloat16), W.astype(jnp.bfloat16),
                    preferred_element_type=jnp.float32) + b
        if relu:
            y = jnp.maximum(y, 0.0)
        h_ref = y

    assert out.shape == (batch, data_dim)
    assert sigmas.shape == (data_dim,)
    assert jnp.allclose(out, h_ref, atol=1e-3, rtol=1e-3), (
        float(jnp.max(jnp.abs(out - h_ref))))

    print("KERNEL_OK")
</pallas_src>

<mosaic_0001>
module attributes {stable_mosaic.version = 11 : i64} {
  func.func @_fused_mlp_kernel(%arg0: i32, %arg1: memref<8x32xf32, #tpu.memory_space<vmem>>, %arg2: memref<32x64xbf16, #tpu.memory_space<vmem>>, %arg3: memref<1x64xf32, #tpu.memory_space<vmem>>, %arg4: memref<64x32xbf16, #tpu.memory_space<vmem>>, %arg5: memref<1x32xf32, #tpu.memory_space<vmem>>, %arg6: memref<32x128xbf16, #tpu.memory_space<vmem>>, %arg7: memref<1x128xf32, #tpu.memory_space<vmem>>, %arg8: memref<8x128xf32, #tpu.memory_space<vmem>>) attributes {dimension_semantics = [#tpu.dimension_semantics<parallel>], iteration_bounds = array<i64: 1>, scalar_prefetch = 0 : i64, scratch_operands = 0 : i64, tpu.core_type = #tpu.core_type<tc>, window_params = [{transform_indices = @transform_0, window_bounds = array<i64: 8, 32>}, {pipeline_mode = #tpu.pipeline_mode<synchronous>, transform_indices = @transform_1, window_bounds = array<i64: 32, 64>}, {pipeline_mode = #tpu.pipeline_mode<synchronous>, transform_indices = @transform_2, window_bounds = array<i64: 1, 64>}, {pipeline_mode = #tpu.pipeline_mode<synchronous>, transform_indices = @transform_3, window_bounds = array<i64: 64, 32>}, {pipeline_mode = #tpu.pipeline_mode<synchronous>, transform_indices = @transform_4, window_bounds = array<i64: 1, 32>}, {pipeline_mode = #tpu.pipeline_mode<synchronous>, transform_indices = @transform_5, window_bounds = array<i64: 32, 128>}, {pipeline_mode = #tpu.pipeline_mode<synchronous>, transform_indices = @transform_6, window_bounds = array<i64: 1, 128>}, {transform_indices = @transform_7, window_bounds = array<i64: 8, 128>}]} {
    %c0 = arith.constant 0 : index
    %c0_0 = arith.constant 0 : index
    %0 = vector.load %arg1[%c0, %c0_0] : memref<8x32xf32, #tpu.memory_space<vmem>>, vector<8x32xf32>
    %c0_1 = arith.constant 0 : index
    %c0_2 = arith.constant 0 : index
    %1 = vector.load %arg2[%c0_1, %c0_2] : memref<32x64xbf16, #tpu.memory_space<vmem>>, vector<32x64xbf16>
    %c0_3 = arith.constant 0 : index
    %c0_4 = arith.constant 0 : index
    %2 = vector.load %arg3[%c0_3, %c0_4] : memref<1x64xf32, #tpu.memory_space<vmem>>, vector<1x64xf32>
    %3 = arith.truncf %0 : vector<8x32xf32> to vector<8x32xbf16>
    %cst = arith.constant dense<0.000000e+00> : vector<8x64xf32>
    %4 = tpu.matmul %3, %1, %cst {dimension_numbers = #tpu.dot_dimension_numbers<[1], [0], [0], [1], [0, 0, 1, 1], [], []>} : vector<8x32xbf16>, vector<32x64xbf16>, vector<8x64xf32> -> vector<8x64xf32>
    %5 = vector.broadcast %2 : vector<1x64xf32> to vector<8x64xf32>
    %6 = arith.addf %4, %5 : vector<8x64xf32>
    %cst_5 = arith.constant 0.000000e+00 : f32
    %7 = vector.broadcast %cst_5 : f32 to vector<8x64xf32>
    %8 = arith.maximumf %6, %7 : vector<8x64xf32>
    %c0_6 = arith.constant 0 : index
    %c0_7 = arith.constant 0 : index
    %9 = vector.load %arg4[%c0_6, %c0_7] : memref<64x32xbf16, #tpu.memory_space<vmem>>, vector<64x32xbf16>
    %c0_8 = arith.constant 0 : index
    %c0_9 = arith.constant 0 : index
    %10 = vector.load %arg5[%c0_8, %c0_9] : memref<1x32xf32, #tpu.memory_space<vmem>>, vector<1x32xf32>
    %11 = arith.truncf %8 : vector<8x64xf32> to vector<8x64xbf16>
    %cst_10 = arith.constant dense<0.000000e+00> : vector<8x32xf32>
    %12 = tpu.matmul %11, %9, %cst_10 {dimension_numbers = #tpu.dot_dimension_numbers<[1], [0], [0], [1], [0, 0, 1, 1], [], []>} : vector<8x64xbf16>, vector<64x32xbf16>, vector<8x32xf32> -> vector<8x32xf32>
    %13 = vector.broadcast %10 : vector<1x32xf32> to vector<8x32xf32>
    %14 = arith.addf %12, %13 : vector<8x32xf32>
    %cst_11 = arith.constant 0.000000e+00 : f32
    %15 = vector.broadcast %cst_11 : f32 to vector<8x32xf32>
    %16 = arith.maximumf %14, %15 : vector<8x32xf32>
    %c0_12 = arith.constant 0 : index
    %c0_13 = arith.constant 0 : index
    %17 = vector.load %arg6[%c0_12, %c0_13] : memref<32x128xbf16, #tpu.memory_space<vmem>>, vector<32x128xbf16>
    %c0_14 = arith.constant 0 : index
    %c0_15 = arith.constant 0 : index
    %18 = vector.load %arg7[%c0_14, %c0_15] : memref<1x128xf32, #tpu.memory_space<vmem>>, vector<1x128xf32>
    %19 = arith.truncf %16 : vector<8x32xf32> to vector<8x32xbf16>
    %cst_16 = arith.constant dense<0.000000e+00> : vector<8x128xf32>
    %20 = tpu.matmul %19, %17, %cst_16 {dimension_numbers = #tpu.dot_dimension_numbers<[1], [0], [0], [1], [0, 0, 1, 1], [], []>} : vector<8x32xbf16>, vector<32x128xbf16>, vector<8x128xf32> -> vector<8x128xf32>
    %21 = vector.broadcast %18 : vector<1x128xf32> to vector<8x128xf32>
    %22 = arith.addf %20, %21 : vector<8x128xf32>
    %c0_17 = arith.constant 0 : index
    %c0_18 = arith.constant 0 : index
    %23 = vector.load %arg8[%c0_17, %c0_18] : memref<8x128xf32, #tpu.memory_space<vmem>>, vector<8x128xf32>
    tpu.vector_store %arg8[%c0_17, %c0_18], %22 {strides = array<i32>} : memref<8x128xf32, #tpu.memory_space<vmem>>, vector<8x128xf32>,
    return
  }
  func.func @transform_0(%arg0: i32) -> (i32, i32) {
    %c0_i32 = arith.constant 0 : i32
    %c0_i32_0 = arith.constant 0 : i32
    return %arg0, %c0_i32 : i32, i32
  }
  func.func @transform_1(%arg0: i32) -> (i32, i32) {
    %c0_i32 = arith.constant 0 : i32
    %c0_i32_0 = arith.constant 0 : i32
    %c0_i32_1 = arith.constant 0 : i32
    return %c0_i32, %c0_i32_0 : i32, i32
  }
  func.func @transform_2(%arg0: i32) -> (i32, i32) {
    %c0_i32 = arith.constant 0 : i32
    %c0_i32_0 = arith.constant 0 : i32
    %c0_i32_1 = arith.constant 0 : i32
    return %c0_i32, %c0_i32_0 : i32, i32
  }
  func.func @transform_3(%arg0: i32) -> (i32, i32) {
    %c0_i32 = arith.constant 0 : i32
    %c0_i32_0 = arith.constant 0 : i32
    %c0_i32_1 = arith.constant 0 : i32
    return %c0_i32, %c0_i32_0 : i32, i32
  }
  func.func @transform_4(%arg0: i32) -> (i32, i32) {
    %c0_i32 = arith.constant 0 : i32
    %c0_i32_0 = arith.constant 0 : i32
    %c0_i32_1 = arith.constant 0 : i32
    return %c0_i32, %c0_i32_0 : i32, i32
  }
  func.func @transform_5(%arg0: i32) -> (i32, i32) {
    %c0_i32 = arith.constant 0 : i32
    %c0_i32_0 = arith.constant 0 : i32
    %c0_i32_1 = arith.constant 0 : i32
    return %c0_i32, %c0_i32_0 : i32, i32
  }
  func.func @transform_6(%arg0: i32) -> (i32, i32) {
    %c0_i32 = arith.constant 0 : i32
    %c0_i32_0 = arith.constant 0 : i32
    %c0_i32_1 = arith.constant 0 : i32
    return %c0_i32, %c0_i32_0 : i32, i32
  }
  func.func @transform_7(%arg0: i32) -> (i32, i32) {
    %c0_i32 = arith.constant 0 : i32
    %c0_i32_0 = arith.constant 0 : i32
    return %arg0, %c0_i32 : i32, i32
  }
}

</mosaic_0001>

<bundles_post_ra>
// kernel: a_call__.1
= control target key start
LH: loop header
LB: loop body
LE: loop exit
PB: predicated region body
PF: predicated region fallthrough
CT: control target
= control target key end

     0   :  { %12 = vsyncpa [#allocation3], 0  ;;  %s645_s0 = inlined_call_operand.hbm [shape: f32[8,32], index: 0, kind: input, shape index: {}]   ;;  %s646_s1 = inlined_call_operand.hbm [shape: bf16[32,64], index: 1, kind: input, shape index: {}]   ;;  %s647_s2 = inlined_call_operand.hbm [shape: f32[1,64], index: 2, kind: input, shape index: {}]   ;;  %s648_s3 = inlined_call_operand.vmem [shape: bf16[64,32], index: 3, kind: input, shape index: {}]   ;;  %s649_s4 = inlined_call_operand.vmem [shape: f32[1,32], index: 4, kind: input, shape index: {}]   ;;  %s650_s5 = inlined_call_operand.hbm [shape: bf16[32,128], index: 5, kind: input, shape index: {}]   ;;  %s651_s6 = inlined_call_operand.vmem [shape: f32[1,128], index: 6, kind: input, shape index: {}]   ;;  %s652_s7 = inlined_call_operand.hbm [shape: f32[8,128], index: 7, kind: output, shape index: {}]  }
   0x1   :  { %13 = vsyncpa [#allocation6], 0 }
   0x2   :  { %14 = vsyncpa [#allocation9], 0 }
   0x3   :  { %15 = vsyncpa [#allocation4], 0  ;;  %s507_s24 = smov [#allocation5]   ;;  %s389_s28 = scalar_lea.hbm %s646_s1, 256 }
   0x4   :  { %s31_s25 = sshll.u32 %s507_s24, 4  ;;  %p390_p0 = scmp.ne.s32.totalorder %s646_s1, %s389_s28  ;;  %s32_s25 = int_to_ptr.vmem [resolvable:$true] %s31_s25 }
   0x5   :  { %p393_p1 = scmp.lt.u32.totalorder %s389_s28, %s646_s1 }
   0x7   :  { %p395_p2 = pnand %p393_p1, %p390_p0 }
   0x9   :  { %398 = shalt.err (!%p395_p2)
}
   0xa   :  { %s399_s10 = scalar_lea.vmem %s32_s25, 256  ;;  %p404_p4 = scmp.lt.s32.totalorder %s32_s25, %s32_s25 }
   0xb   :  { %p400_p3 = scmp.ne.s32.totalorder %s32_s25, %s399_s10  ;;  %p405_p5 = scmp.lt.s32.totalorder %s399_s10, %s399_s10 }
   0xd   :  { %p406_p6 = por %p405_p5, %p404_p4 }
   0xf   :  { %p407_p7 = pnand %p406_p6, %p400_p3 }
  0x11   :  { %410 = shalt.err (!%p407_p7)
}
  0x12   :  { %s508_s11 = smov 64   ;;  %s509_s12 = smov 4  }
  0x13   :  { %37 = dma.hbm_to_vmem [thread:$0]  %s646_s1, 256, %s32_s25, [#allocation6], %s508_s11, %s508_s11, %s509_s12  }
  0x14   :  { %s510_s15 = smov [#allocation2]   ;;  %s511_s17 = smov [#allocation7]  }
  0x15   :  { %s22_s16 = sshll.u32 %s510_s15, 4  ;;  %s44_s18 = sshll.u32 %s511_s17, 4  ;;  %s23_s16 = int_to_ptr.vmem [resolvable:$true] %s22_s16  ;;  %s45_s18 = int_to_ptr.vmem [resolvable:$true] %s44_s18 }
  0x16   :  { %s411_s21 = scalar_lea.hbm %s645_s0, 128 }
  0x17   :  { %p412_p8 = scmp.ne.s32.totalorder %s645_s0, %s411_s21  ;;  %p415_p9 = scmp.lt.u32.totalorder %s411_s21, %s645_s0 }
  0x19   :  { %p417_p10 = pnand %p415_p9, %p412_p8 }
  0x1b   :  { %420 = shalt.err (!%p417_p10)
}
  0x1c   :  { %s421_s1 = scalar_lea.vmem %s23_s16, 128  ;;  %p426_p12 = scmp.lt.s32.totalorder %s23_s16, %s23_s16 }
  0x1d   :  { %p422_p11 = scmp.ne.s32.totalorder %s23_s16, %s421_s1  ;;  %p427_p13 = scmp.lt.s32.totalorder %s421_s1, %s421_s1 }
  0x1f   :  { %p428_p0 = por %p427_p13, %p426_p12 }
  0x21   :  { %p429_p1 = pnand %p428_p0, %p422_p11 }
  0x23   :  { %432 = shalt.err (!%p429_p1)
}
  0x24   :  { %25 = dma.hbm_to_vmem [thread:$0]  %s645_s0, 128, %s23_s16, [#allocation3]  }
  0x25   :  { %s433_s30 = scalar_lea.hbm %s647_s2, 16 }
  0x26   :  { %p434_p2 = scmp.ne.s32.totalorder %s647_s2, %s433_s30  ;;  %p437_p3 = scmp.lt.u32.totalorder %s433_s30, %s647_s2 }
  0x28   :  { %p439_p4 = pnand %p437_p3, %p434_p2 }
  0x2a   :  { %442 = shalt.err (!%p439_p4)
}
  0x2b   :  { %s443_s14 = scalar_lea.vmem %s45_s18, 16  ;;  %s447_s15 = scalar_lea.vmem %s45_s18, 32 }
  0x2c   :  { %p444_p5 = scmp.ne.s32.totalorder %s45_s18, %s443_s14  ;;  %p448_p6 = scmp.lt.s32.totalorder %s45_s18, %s45_s18 }
  0x2d   :  { %p449_p7 = scmp.lt.s32.totalorder %s447_s15, %s443_s14 }
  0x2f   :  { %p450_p8 = por %p449_p7, %p448_p6 }
  0x31   :  { %p451_p9 = pnand %p450_p8, %p444_p5 }
  0x33   :  { %454 = shalt.err (!%p451_p9)
}
  0x34   :  { %47 = dma.hbm_to_vmem [thread:$0]  %s647_s2, 16, %s45_s18, [#allocation6]  }
  0x35   :  { %s512_s17 = smov [#allocation8]   ;;  %s455_s22 = scalar_lea.hbm %s650_s5, 256 }
  0x36   :  { %s57_s19 = sshll.u32 %s512_s17, 4  ;;  %p456_p10 = scmp.ne.s32.totalorder %s650_s5, %s455_s22  ;;  %s58_s19 = int_to_ptr.vmem [resolvable:$true] %s57_s19 }
  0x37   :  { %p459_p11 = scmp.lt.u32.totalorder %s455_s22, %s650_s5 }
  0x39   :  { %p461_p12 = pnand %p459_p11, %p456_p10 }
  0x3b   :  { %464 = shalt.err (!%p461_p12)
}
  0x3c   :  { %s465_s25 = scalar_lea.vmem %s58_s19, 256  ;;  %p470_p0 = scmp.lt.s32.totalorder %s58_s19, %s58_s19 }
  0x3d   :  { %p466_p13 = scmp.ne.s32.totalorder %s58_s19, %s465_s25  ;;  %p471_p1 = scmp.lt.s32.totalorder %s465_s25, %s465_s25 }
  0x3f   :  { %p472_p2 = por %p471_p1, %p470_p0 }
  0x41   :  { %p473_p3 = pnand %p472_p2, %p466_p13 }
  0x43   :  { %476 = shalt.err (!%p473_p3)
}
  0x44   :  { %63 = dma.hbm_to_vmem [thread:$0]  %s650_s5, 256, %s58_s19, [#allocation9], %s508_s11, %s508_s11, %s509_s12  }
  0x45   :  { %499 = dma.done.wait [#allocation3], 128  }
  0x46   :  { %500 = vsyncadd [#allocation3], 4294967168 }
  0x47   :  { %501 = dma.done.wait [#allocation6], 272  }
  0x48   :  { %502 = vsyncadd [#allocation6], 4294967024 }
  0x49   :  { %503 = dma.done.wait [#allocation9], 256  }
  0x4a   :  { %504 = vsyncadd [#allocation9], 4294967040  ;;  %v513_v0 = vmov 0.0   ;;  %vm514_vm0 = vmmov 0   ;;  %v381_v1 = vld [vmem:[#allocation5] sm:$0xff]   ;;  %v382_v2 = vld [vmem:[#allocation5 + $0x8] sm:$0xff]  }
  0x4b   :  { %344 = vmatprep.subr.bf16.mxu0 %v513_v0  ;;  %348 = vmatprep.mubr.msk.bf16.mxu0 %vm514_vm0, %v513_v0  ;;  %v79_v3 = vld [vmem:[#allocation2] sm:$0xff]  ;;  %vm104_vm1 = vcmask 261120   ;;  %v384_v5 = vld [vmem:[%s648_s3 + $0x8] sm:$0xff]   ;;  %v385_v7 = vld [vmem:[%s648_s3 + $0x10] sm:$0xff]   ;;  %vm189_vm2 = vcmask 523264   ;;  %s515_s14 = smov [#allocation10]  }
  0x4c   :  { %352 = vmatprep.subr.bf16.mxu1 %v513_v0  ;;  %360 = vmatprep.mubr.msk.bf16.mxu1 %vm514_vm0, %v513_v0  ;;  %v383_v4 = vld [vmem:[%s648_s3] sm:$0xff]   ;;  %v85_v6 = vpack.c.bf16 %v79_v3, %v79_v3  ;;  %v386_v8 = vld [vmem:[%s648_s3 + $0x18] sm:$0xff]   ;;  %s308_s15 = sshll.u32 %s515_s14, 4  ;;  %s309_s15 = int_to_ptr.vmem [resolvable:$true] %s308_s15 }
  0x4d   :  { %345 = vmatpush3.bf16.msra.mxu0 %v381_v1  ;;  %353 = vmatpush3.bf16.msra.mxu1 %v383_v4  ;;  %v387_v9 = vld [vmem:[#allocation8] sm:$0xff]   ;;  %v319_v10 = vld [vmem:[#allocation7] ss:$0 sm:$0xff]  ;;  %v388_v18 = vld [vmem:[#allocation8 + $0x8] sm:$0xff]   ;;  %p482_p5 = scmp.lt.s32.totalorder %s309_s15, %s309_s15 }
  0x4e   :  { %346 = vmatprep.subr.bf16.mxu0 %v513_v0  ;;  %354 = vmatprep.subr.bf16.mxu1 %v513_v0  ;;  %v323_v19 = vld [vmem:[%s649_s4] ss:$0 sm:$0xff]  ;;  %s477_s4 = scalar_lea.vmem %s309_s15, 128 }
  0x4f   :  { %v329_v27 = vld [vmem:[%s651_s6] ss:$0 sm:$0xff]  ;;  %p478_p4 = scmp.ne.s32.totalorder %s309_s15, %s477_s4  ;;  %p483_p6 = scmp.lt.s32.totalorder %s477_s4, %s477_s4 }
  0x51   :  { %347 = vmatpush3.bf16.msra.mxu0 %v382_v2  ;;  %355 = vmatpush3.bf16.msra.mxu1 %v384_v5  ;;  %p484_p7 = por %p483_p6, %p482_p5 }
  0x52   :  { %364 = vmatprep.subr.bf16.mxu0 %v513_v0  ;;  %356 = vmatprep.subr.bf16.mxu1 %v513_v0 }
  0x53   :  { %p485_p8 = pnand %p484_p7, %p478_p4 }
  0x54   :  { %349 = vmatmul.mubr.msk.bf16.vlgmr.msra.gmra.mrb[0].mxu0 %vm104_vm1, %v85_v6 }
  0x55   :  { %368 = vmatprep.mubr.msk.bf16.mxu0 %vm514_vm0, %v513_v0  ;;  %357 = vmatpush3.bf16.msra.mxu1 %v385_v7 }
  0x56   :  { %358 = vmatprep.subr.bf16.mxu1 %v513_v0  ;;  %365 = vmatpush3.bf16.msra.mxu0 %v387_v9 }
  0x57   :  { %366 = vmatprep.subr.bf16.mxu0 %v513_v0 }
  0x59   :  { %359 = vmatpush3.bf16.msra.mxu1 %v386_v8 }
  0x5a   :  { %367 = vmatpush3.bf16.msra.mxu0 %v388_v18 }
 0x127   :  { %v142_v11 = vpop.f32.mrb[0].mxu0 }
 0x128   :  { %v143_v12 = vadd.f32 %v319_v10, %v142_v11  ;;  %v350_v13 = vpop.f32.mrb[1].mxu0 }
 0x129   :  { %v145_v14 = vpop.f32.mrb[2].mxu0 }
 0x12a   :  { %v148_v15 = vmax.f32 %v143_v12, 0.0  ;;  %v351_v16 = vpop.f32.mrb[3].mxu0 }
 0x12c   :  { %v158_v17 = vpack.c.bf16 %v148_v15, %v148_v15 }
 0x12e   :  { %361 = vmatmul.mubr.msk.bf16.vlgmr.msra.gmra.mrb[0].mxu1 %vm189_vm2, %v158_v17 }
 0x201   :  { %v227_v20 = vpop.f32.mrb[0].mxu1 }
 0x202   :  { %v228_v21 = vadd.f32 %v323_v19, %v227_v20  ;;  %v362_v22 = vpop.f32.mrb[1].mxu1 }
 0x203   :  { %v230_v23 = vpop.f32.mrb[2].mxu1 }
 0x204   :  { %v233_v24 = vmax.f32 %v228_v21, 0.0  ;;  %v363_v25 = vpop.f32.mrb[3].mxu1 }
 0x206   :  { %v239_v26 = vpack.c.bf16 %v233_v24, %v233_v24 }
 0x208   :  { %369 = vmatmul.mubr.msk.bf16.vlgmr.msra.gmra.mrb[4].mxu0 %vm104_vm1, %v239_v26 }
 0x2db   :  { %v295_v28 = vpop.f32.mrb[4].mxu0 }
 0x2dc   :  { %v296_v29 = vadd.f32 %v329_v27, %v295_v28  ;;  %v370_v30 = vpop.f32.mrb[5].mxu0 }
 0x2dd   :  { %v298_v31 = vpop.f32.mrb[6].mxu0 }
 0x2de   :  { %301 = vst [vmem:[#allocation10] sm:$0xff] %v296_v29  ;;  %v371_v32 = vpop.f32.mrb[7].mxu0 }
 0x2df   :  { %488 = shalt.err (!%p485_p8)
}
 0x2e0   :  { %s489_s6 = scalar_lea.hbm %s652_s7, 128 }
 0x2e1   :  { %p490_p9 = scmp.ne.s32.totalorder %s652_s7, %s489_s6  ;;  %p493_p10 = scmp.lt.u32.totalorder %s489_s6, %s652_s7 }
 0x2e3   :  { %p495_p11 = pnand %p493_p10, %p490_p9 }
 0x2e5   :  { %498 = shalt.err (!%p495_p11)
}
 0x2e6   :  { %311 = dma.vmem_to_hbm [thread:$0]  %s309_s15, 128, %s652_s7, [#allocation4]  }
 0x2e7   :  { %505 = dma.done.wait [#allocation4], 128  }
 0x2e8   :  { %506 = vsyncadd [#allocation4], 4294967168 }
 0x2e9   :  { %315 = vsyncpa [#allocation3], 1 }
 0x2ea   :  { %316 = vsyncpa [#allocation6], 1 }
 0x2eb   :  { %317 = vsyncpa [#allocation9], 1 }
 0x2ec   :  { %318 = vsyncpa [#allocation4], 1 }

</bundles_post_ra>
